<compile_context>
chip_gen: v7x
topology: tpu7x:2x2x1
jax: 0.10.0
libtpu: 0.0.40
codegen_flags: <defaults>
</compile_context>

<pallas_src>
import jax
import jax.numpy as jnp
import numpy as np
from jax.experimental import pallas as pl
from jax.experimental.pallas import tpu as pltpu

H_SA = 64            # SA_fc width
H_GRID = 64          # SA_grid width
H1 = H_SA + H_GRID   # 128: fused layer-1 width, laid out as [own | grid]
H_MERGE = 256        # merge_fc_grid width


def _critic_kernel(x_ref, w1_ref, b1_ref, w2_ref, b2_ref,
                   w_out_ref, b_out_ref, o_ref):
    f32 = jnp.float32

    # Fused SA_fc + SA_grid: one bf16 matmul against the block-diagonal W1
    # produces [own | grid] in a single (bb, 128) activation, then bias + ReLU.
    h1 = jnp.dot(x_ref[...], w1_ref[...], preferred_element_type=f32)
    h1 = jnp.maximum(h1 + b1_ref[...], 0.0)                     # (bb, 128) f32

    # merge_fc_grid: single (bb,128) @ (128,256) matmul (original W_merge).
    h2 = jnp.dot(h1.astype(jnp.bfloat16), w2_ref[...],
                 preferred_element_type=f32)
    h2 = jnp.maximum(h2 + b2_ref[...], 0.0)                     # (bb, 256) f32

    # out_feature_q (256 -> 1): VPU multiply + lane reduce (keep N=1 off the
    # MXU); bias comes from an SMEM scalar.
    q = jnp.sum(h2 * w_out_ref[...], axis=-1, keepdims=True) + b_out_ref[0]
    o_ref[...] = q.astype(o_ref.dtype)


def _round_up(x, m):
    return ((x + m - 1) // m) * m


def _choose_tiling(B, block_b):
    """Pick (bb, n_blocks, B_pad): bb multiple of 16, minimal padding, and at
    least 2 blocks when there is enough work (v7x has 2 TensorCores)."""
    n_blocks = pl.cdiv(B, block_b)
    if n_blocks == 1 and B > block_b // 2:
        n_blocks = 2                     # let the parallel grid shard on v7x
    bb = _round_up(pl.cdiv(B, n_blocks), 16)
    return bb, n_blocks, bb * n_blocks


def critic_two_portion_forward(state0, state1, action, kernel_params,
                               block_b=2048):
    """state0: (B, ds0), state1: (B, ds1), action: (B, na) -> q: (B, 1) f32."""
    w1, b1, w2, b2, w_out, b_out = kernel_params
    B = state0.shape[0]
    ds0, ds1, na = state0.shape[1], state1.shape[1], action.shape[1]
    d_in = ds0 + na + ds1
    assert w1.shape == (d_in, H1)

    bb, n_blocks, B_pad = _choose_tiling(B, block_b)

    # One fused bf16 input slab [state0 | action | state1]: concat + cast
    # (+ pad) fuse into a single XLA copy pass; halves DMA bytes vs f32 and
    # feeds the kernel one input stream instead of three.
    x = jnp.concatenate([state0, action, state1], axis=1).astype(jnp.bfloat16)
    if B_pad != B:
        x = jnp.pad(x, ((0, B_pad - B), (0, 0)))

    resident = lambda shape: pl.BlockSpec(shape, lambda i: (0,) * len(shape))

    flops = 2 * B_pad * (d_in * H1 + H1 * H_MERGE + H_MERGE)
    bytes_accessed = (2 * B_pad * d_in + 4 * B_pad
                      + 2 * (w1.size + w2.size)
                      + 4 * (b1.size + b2.size + w_out.size + b_out.size))

    out = pl.pallas_call(
        _critic_kernel,
        out_shape=jax.ShapeDtypeStruct((B_pad, 1), jnp.float32),
        grid=(n_blocks,),
        in_specs=[
            pl.BlockSpec((bb, d_in), lambda i: (i, 0)),   # fused input (bf16)
            resident((d_in, H1)),                         # W1 block-diag bf16
            resident((1, H1)),                            # b1 = [b_sa|b_grid]
            resident((H1, H_MERGE)),                      # W_merge bf16
            resident((1, H_MERGE)),                       # b_merge f32
            resident((1, H_MERGE)),                       # w_out row f32 (VPU)
            pl.BlockSpec(memory_space=pltpu.MemorySpace.SMEM),  # b_out scalar
        ],
        out_specs=pl.BlockSpec((bb, 1), lambda i: (i, 0)),
        compiler_params=pltpu.CompilerParams(
            dimension_semantics=("parallel",)),
        cost_estimate=pl.CostEstimate(flops=flops, transcendentals=0,
                                      bytes_accessed=bytes_accessed),
    )(x, w1, b1, w2, b2, w_out, b_out)

    return out[:B] if B_pad != B else out


def init_params(key, ds0, ds1, na):
    """PyTorch nn.Linear default init (uniform +-1/sqrt(fan_in)); weights
    stored (in, out), matching the original module's layer layout."""
    ks = jax.random.split(key, 8)

    def linear(kw, kb, fan_in, fan_out):
        bound = 1.0 / np.sqrt(fan_in)
        w = jax.random.uniform(kw, (fan_in, fan_out), jnp.float32, -bound, bound)
        b = jax.random.uniform(kb, (1, fan_out), jnp.float32, -bound, bound)
        return w, b

    w_sa, b_sa = linear(ks[0], ks[1], ds0 + na, H_SA)     # SA_fc
    w_g, b_g = linear(ks[2], ks[3], ds1, H_GRID)          # SA_grid
    w_m, b_m = linear(ks[4], ks[5], H1, H_MERGE)          # merge_fc_grid
    w_o, b_o = linear(ks[6], ks[7], H_MERGE, 1)           # out_feature_q
    return (w_sa, b_sa, w_g, b_g, w_m, b_m, w_o, b_o)


def prepare_kernel_params(params, ds0, na, ds1):
    """One-time repack of PyTorch-layout params into the fused kernel layout."""
    w_sa, b_sa, w_g, b_g, w_m, b_m, w_o, b_o = params
    d_sa = ds0 + na
    bf16 = jnp.bfloat16
    # Block-diagonal layer-1 weight: [state0|action] rows feed the own half
    # (cols 0:64), state1 rows feed the grid half (cols 64:128).
    w1 = jnp.zeros((d_sa + ds1, H1), jnp.float32)
    w1 = w1.at[:d_sa, :H_SA].set(w_sa)
    w1 = w1.at[d_sa:, H_SA:].set(w_g)
    b1 = jnp.concatenate([b_sa, b_g], axis=1)             # (1, 128)
    w_out = jnp.transpose(w_o)                            # (1, 256) VPU row
    b_out = jnp.reshape(b_o, (1,))                        # (1,) SMEM scalar
    return (w1.astype(bf16), b1, w_m.astype(bf16), b_m, w_out, b_out)


def reference_forward(state0, state1, action, params):
    """Pure-JAX f32 reference matching the PyTorch forward."""
    w_sa, b_sa, w_g, b_g, w_m, b_m, w_o, b_o = params
    own = jax.nn.relu(jnp.concatenate([state0, action], axis=1) @ w_sa + b_sa)
    grd = jax.nn.relu(state1 @ w_g + b_g)
    merged = jax.nn.relu(jnp.concatenate([own, grd], axis=1) @ w_m + b_m)
    return merged @ w_o + b_o


if __name__ == "__main__":
    key = jax.random.PRNGKey(0)
    kp, k0, k1, ka = jax.random.split(key, 4)

    # Small shapes consistent with the module: critic_obs=(6, 20), n_actions=2.
    B, ds0, ds1, na = 8, 6, 20, 2
    params = init_params(kp, ds0, ds1, na)
    kernel_params = prepare_kernel_params(params, ds0, na, ds1)

    state0 = jax.random.normal(k0, (B, ds0), jnp.float32)
    state1 = jax.random.normal(k1, (B, ds1), jnp.float32)
    action = jax.random.normal(ka, (B, na), jnp.float32)

    out = critic_two_portion_forward(state0, state1, action, kernel_params)
    out = jax.block_until_ready(out)

    ref = reference_forward(state0, state1, action, params)
    # bf16 MXU inputs (f32 accumulation) -> loosened tolerance vs f32 reference.
    np.testing.assert_allclose(np.asarray(out), np.asarray(ref),
                               rtol=2e-2, atol=2e-2)
    assert out.shape == (B, 1)
    print("KERNEL_OK")
</pallas_src>

<mosaic_0001>
module attributes {stable_mosaic.version = 11 : i64} {
  func.func @_critic_kernel(%arg0: i32, %arg1: memref<16x28xbf16, #tpu.memory_space<vmem>>, %arg2: memref<28x128xbf16, #tpu.memory_space<vmem>>, %arg3: memref<1x128xf32, #tpu.memory_space<vmem>>, %arg4: memref<128x256xbf16, #tpu.memory_space<vmem>>, %arg5: memref<1x256xf32, #tpu.memory_space<vmem>>, %arg6: memref<1x256xf32, #tpu.memory_space<vmem>>, %arg7: memref<1xf32, #tpu.memory_space<smem>>, %arg8: memref<16x1xf32, #tpu.memory_space<vmem>>) attributes {dimension_semantics = [#tpu.dimension_semantics<parallel>], iteration_bounds = array<i64: 1>, scalar_prefetch = 0 : i64, scratch_operands = 0 : i64, tpu.core_type = #tpu.core_type<tc>, window_params = [{transform_indices = @transform_0, window_bounds = array<i64: 16, 28>}, {pipeline_mode = #tpu.pipeline_mode<synchronous>, transform_indices = @transform_1, window_bounds = array<i64: 28, 128>}, {pipeline_mode = #tpu.pipeline_mode<synchronous>, transform_indices = @transform_2, window_bounds = array<i64: 1, 128>}, {pipeline_mode = #tpu.pipeline_mode<synchronous>, transform_indices = @transform_3, window_bounds = array<i64: 128, 256>}, {pipeline_mode = #tpu.pipeline_mode<synchronous>, transform_indices = @transform_4, window_bounds = array<i64: 1, 256>}, {pipeline_mode = #tpu.pipeline_mode<synchronous>, transform_indices = @transform_5, window_bounds = array<i64: 1, 256>}, {transform_indices = @transform_6, window_bounds = array<i64: 1>}, {transform_indices = @transform_7, window_bounds = array<i64: 16, 1>}]} {
    %c0 = arith.constant 0 : index
    %c0_0 = arith.constant 0 : index
    %0 = vector.load %arg1[%c0, %c0_0] : memref<16x28xbf16, #tpu.memory_space<vmem>>, vector<16x28xbf16>
    %c0_1 = arith.constant 0 : index
    %c0_2 = arith.constant 0 : index
    %1 = vector.load %arg2[%c0_1, %c0_2] : memref<28x128xbf16, #tpu.memory_space<vmem>>, vector<28x128xbf16>
    %cst = arith.constant dense<0.000000e+00> : vector<16x128xf32>
    %2 = tpu.matmul %0, %1, %cst {dimension_numbers = #tpu.dot_dimension_numbers<[1], [0], [0], [1], [0, 0, 1, 1], [], []>} : vector<16x28xbf16>, vector<28x128xbf16>, vector<16x128xf32> -> vector<16x128xf32>
    %c0_3 = arith.constant 0 : index
    %c0_4 = arith.constant 0 : index
    %3 = vector.load %arg3[%c0_3, %c0_4] : memref<1x128xf32, #tpu.memory_space<vmem>>, vector<1x128xf32>
    %4 = vector.broadcast %3 : vector<1x128xf32> to vector<16x128xf32>
    %5 = arith.addf %2, %4 : vector<16x128xf32>
    %cst_5 = arith.constant 0.000000e+00 : f32
    %6 = vector.broadcast %cst_5 : f32 to vector<16x128xf32>
    %7 = arith.maximumf %5, %6 : vector<16x128xf32>
    %8 = arith.truncf %7 : vector<16x128xf32> to vector<16x128xbf16>
    %c0_6 = arith.constant 0 : index
    %c0_7 = arith.constant 0 : index
    %9 = vector.load %arg4[%c0_6, %c0_7] : memref<128x256xbf16, #tpu.memory_space<vmem>>, vector<128x256xbf16>
    %cst_8 = arith.constant dense<0.000000e+00> : vector<16x256xf32>
    %10 = tpu.matmul %8, %9, %cst_8 {dimension_numbers = #tpu.dot_dimension_numbers<[1], [0], [0], [1], [0, 0, 1, 1], [], []>} : vector<16x128xbf16>, vector<128x256xbf16>, vector<16x256xf32> -> vector<16x256xf32>
    %c0_9 = arith.constant 0 : index
    %c0_10 = arith.constant 0 : index
    %11 = vector.load %arg5[%c0_9, %c0_10] : memref<1x256xf32, #tpu.memory_space<vmem>>, vector<1x256xf32>
    %12 = vector.broadcast %11 : vector<1x256xf32> to vector<16x256xf32>
    %13 = arith.addf %10, %12 : vector<16x256xf32>
    %cst_11 = arith.constant 0.000000e+00 : f32
    %14 = vector.broadcast %cst_11 : f32 to vector<16x256xf32>
    %15 = arith.maximumf %13, %14 : vector<16x256xf32>
    %c0_12 = arith.constant 0 : index
    %c0_13 = arith.constant 0 : index
    %16 = vector.load %arg6[%c0_12, %c0_13] : memref<1x256xf32, #tpu.memory_space<vmem>>, vector<1x256xf32>
    %17 = vector.broadcast %16 : vector<1x256xf32> to vector<16x256xf32>
    %18 = arith.mulf %15, %17 : vector<16x256xf32>
    %cst_14 = arith.constant dense<0.000000e+00> : vector<16xf32>
    %19 = vector.multi_reduction <add>, %18, %cst_14 [1] : vector<16x256xf32> to vector<16xf32>
    %20 = vector.shape_cast %19 : vector<16xf32> to vector<16x1xf32>
    %c0_15 = arith.constant 0 : index
    %21 = memref.load %arg7[%c0_15] : memref<1xf32, #tpu.memory_space<smem>>
    %22 = vector.broadcast %21 : f32 to vector<16x1xf32>
    %23 = arith.addf %20, %22 : vector<16x1xf32>
    %c0_16 = arith.constant 0 : index
    %c0_17 = arith.constant 0 : index
    %24 = vector.load %arg8[%c0_16, %c0_17] : memref<16x1xf32, #tpu.memory_space<vmem>>, vector<16x1xf32>
    tpu.vector_store %arg8[%c0_16, %c0_17], %23 {strides = array<i32>} : memref<16x1xf32, #tpu.memory_space<vmem>>, vector<16x1xf32>,
    return
  }
  func.func @transform_0(%arg0: i32) -> (i32, i32) {
    %c0_i32 = arith.constant 0 : i32
    %c0_i32_0 = arith.constant 0 : i32
    return %arg0, %c0_i32 : i32, i32
  }
  func.func @transform_1(%arg0: i32) -> (i32, i32) {
    %c0_i32 = arith.constant 0 : i32
    %c0_i32_0 = arith.constant 0 : i32
    %c0_i32_1 = arith.constant 0 : i32
    return %c0_i32, %c0_i32_0 : i32, i32
  }
  func.func @transform_2(%arg0: i32) -> (i32, i32) {
    %c0_i32 = arith.constant 0 : i32
    %c0_i32_0 = arith.constant 0 : i32
    %c0_i32_1 = arith.constant 0 : i32
    return %c0_i32, %c0_i32_0 : i32, i32
  }
  func.func @transform_3(%arg0: i32) -> (i32, i32) {
    %c0_i32 = arith.constant 0 : i32
    %c0_i32_0 = arith.constant 0 : i32
    %c0_i32_1 = arith.constant 0 : i32
    return %c0_i32, %c0_i32_0 : i32, i32
  }
  func.func @transform_4(%arg0: i32) -> (i32, i32) {
    %c0_i32 = arith.constant 0 : i32
    %c0_i32_0 = arith.constant 0 : i32
    %c0_i32_1 = arith.constant 0 : i32
    return %c0_i32, %c0_i32_0 : i32, i32
  }
  func.func @transform_5(%arg0: i32) -> (i32, i32) {
    %c0_i32 = arith.constant 0 : i32
    %c0_i32_0 = arith.constant 0 : i32
    %c0_i32_1 = arith.constant 0 : i32
    return %c0_i32, %c0_i32_0 : i32, i32
  }
  func.func @transform_6(%arg0: i32) -> i32 {
    %c0_i32 = arith.constant 0 : i32
    %c0_i32_0 = arith.constant 0 : i32
    return %c0_i32 : i32
  }
  func.func @transform_7(%arg0: i32) -> (i32, i32) {
    %c0_i32 = arith.constant 0 : i32
    %c0_i32_0 = arith.constant 0 : i32
    return %arg0, %c0_i32 : i32, i32
  }
}

</mosaic_0001>

<bundles_post_ra>
// kernel: tpu_custom_call.1
= control target key start
LH: loop header
LB: loop body
LE: loop exit
PB: predicated region body
PF: predicated region fallthrough
CT: control target
= control target key end

     0   :  { %13 = vsyncpa [#allocation4], 0  ;;  %s590_s0 = inlined_call_operand.hbm [shape: bf16[16,28], index: 0, kind: input, shape index: {}]   ;;  %s591_s1 = inlined_call_operand.hbm [shape: bf16[28,128], index: 1, kind: input, shape index: {}]   ;;  %s592_s2 = inlined_call_operand.vmem [shape: f32[1,128], index: 2, kind: input, shape index: {}]   ;;  %s593_s3 = inlined_call_operand.hbm [shape: bf16[128,256], index: 3, kind: input, shape index: {}]   ;;  %s594_s4 = inlined_call_operand.vmem [shape: f32[1,256], index: 4, kind: input, shape index: {}]   ;;  %s595_s5 = inlined_call_operand.vmem [shape: f32[1,256], index: 5, kind: input, shape index: {}]   ;;  %s596_s6 = inlined_call_operand.<no memory space> [shape: f32[1], index: 6, kind: input, shape index: {}]   ;;  %s597_s7 = inlined_call_operand.vmem [shape: f32[16,1], index: 7, kind: output, shape index: {}]  }
   0x1   :  { %14 = vsyncpa [#allocation6], 0  ;;  %s479_s24 = smov [#allocation5]   ;;  %s480_s26 = smov [#allocation3]  }
   0x2   :  { %s32_s25 = sshll.u32 %s479_s24, 4  ;;  %s20_s27 = sshll.u32 %s480_s26, 4  ;;  %s33_s25 = int_to_ptr.vmem [resolvable:$true] %s32_s25  ;;  %s529_s27 = int_to_ptr.vmem [resolvable:$true] %s20_s27 }
   0x3   :  { %s409_s30 = scalar_lea.hbm %s591_s1, 256 }
   0x4   :  { %p410_p0 = scmp.ne.s32.totalorder %s591_s1, %s409_s30  ;;  %p413_p1 = scmp.lt.u32.totalorder %s409_s30, %s591_s1 }
   0x6   :  { %p415_p2 = pnand %p413_p1, %p410_p0 }
   0x8   :  { %418 = shalt.err (!%p415_p2)
}
   0x9   :  { %s419_s12 = scalar_lea.vmem %s33_s25, 256  ;;  %p424_p4 = scmp.lt.s32.totalorder %s33_s25, %s33_s25 }
   0xa   :  { %p420_p3 = scmp.ne.s32.totalorder %s33_s25, %s419_s12  ;;  %p425_p5 = scmp.lt.s32.totalorder %s419_s12, %s419_s12 }
   0xc   :  { %p426_p6 = por %p425_p5, %p424_p4 }
   0xe   :  { %p427_p7 = pnand %p426_p6, %p420_p3 }
  0x10   :  { %430 = shalt.err (!%p427_p7)
}
  0x11   :  { %s481_s13 = smov 64   ;;  %s482_s14 = smov 4  }
  0x12   :  { %38 = dma.hbm_to_vmem [thread:$0]  %s591_s1, 256, %s33_s25, [#allocation6], %s481_s13, %s481_s13, %s482_s14  }
  0x13   :  { %s431_s19 = scalar_lea.hbm %s590_s0, 128 }
  0x14   :  { %p432_p8 = scmp.ne.s32.totalorder %s590_s0, %s431_s19  ;;  %p435_p9 = scmp.lt.u32.totalorder %s431_s19, %s590_s0 }
  0x16   :  { %p437_p10 = pnand %p435_p9, %p432_p8 }
  0x18   :  { %440 = shalt.err (!%p437_p10)
}
  0x19   :  { %s441_s24 = scalar_lea.vmem %s529_s27, 128  ;;  %p446_p12 = scmp.lt.s32.totalorder %s529_s27, %s529_s27 }
  0x1a   :  { %p442_p11 = scmp.ne.s32.totalorder %s529_s27, %s441_s24  ;;  %p447_p13 = scmp.lt.s32.totalorder %s441_s24, %s441_s24 }
  0x1c   :  { %p448_p0 = por %p447_p13, %p446_p12 }
  0x1e   :  { %p449_p1 = pnand %p448_p0, %p442_p11 }
  0x20   :  { %452 = shalt.err (!%p449_p1)
}
  0x21   :  { %26 = dma.hbm_to_vmem [thread:$0]  %s590_s0, 128, %s529_s27, [#allocation4], %s481_s13, %s481_s13, %s482_s14  }
  0x22   :  { %s483_s26 = smov [#allocation7]   ;;  %s453_s8 = scalar_lea.hbm %s593_s3, 2048 }
  0x23   :  { %s46_s28 = sshll.u32 %s483_s26, 4  ;;  %p454_p2 = scmp.ne.s32.totalorder %s593_s3, %s453_s8  ;;  %s47_s28 = int_to_ptr.vmem [resolvable:$true] %s46_s28 }
  0x24   :  { %p457_p3 = scmp.lt.u32.totalorder %s453_s8, %s593_s3 }
  0x26   :  { %p459_p4 = pnand %p457_p3, %p454_p2 }
  0x28   :  { %462 = shalt.err (!%p459_p4)
}
  0x29   :  { %s463_s15 = scalar_lea.vmem %s47_s28, 2048  ;;  %p468_p6 = scmp.lt.s32.totalorder %s47_s28, %s47_s28 }
  0x2a   :  { %p464_p5 = scmp.ne.s32.totalorder %s47_s28, %s463_s15  ;;  %p469_p7 = scmp.lt.s32.totalorder %s463_s15, %s463_s15 }
  0x2c   :  { %p470_p8 = por %p469_p7, %p468_p6 }
  0x2e   :  { %p471_p9 = pnand %p470_p8, %p464_p5 }
  0x30   :  { %474 = shalt.err (!%p471_p9)
}
  0x31   :  { %s484_s0 = smov 128   ;;  %s485_s27 = smov 8  }
  0x32   :  { %52 = dma.hbm_to_vmem [thread:$0]  %s593_s3, 2048, %s47_s28, [#allocation6], %s484_s0, %s484_s0, %s485_s27  }
  0x33   :  { %475 = dma.done.wait [#allocation4], 128  }
  0x34   :  { %476 = vsyncadd [#allocation4], 4294967168 }
  0x35   :  { %477 = dma.done.wait [#allocation6], 2304  }
  0x36   :  { %478 = vsyncadd [#allocation6], 4294964992  ;;  %v486_v0 = vmov 0.0   ;;  %vm487_vm0 = vmmov 0   ;;  %v382_v1 = vld [vmem:[#allocation5] sm:$0xff]   ;;  %vm102_vm1 = vcmask 1045504   ;;  %v168_v32 = vlaneseq }
  0x37   :  { %364 = vmatprep.subr.bf16.mxu0 %v486_v0  ;;  %368 = vmatprep.mubr.msk.bf16.mxu0 %vm487_vm0, %v486_v0  ;;  %v383_v2 = vld [vmem:[#allocation5 + $0x8] sm:$0x3f]   ;;  %v385_v4 = vld [vmem:[#allocation7 + $0x4] ss:$8 sps:$4 sm:$0xff]   ;;  %v387_v5 = vld [vmem:[#allocation7] ss:$8 sps:$4 sm:$0xff]   ;;  %v328_v60 = vstv %s596_s6 }
  0x38   :  { %365 = vmatpush3.bf16.msra.mxu0 %v382_v1  ;;  %v104_v3 = vsel %vm102_vm1, %v383_v2, 0  ;;  %v384_v6 = vld [vmem:[#allocation3] sm:$0xff]   ;;  %258 = vmatprep.subr.bf16.mxu1 %v385_v4  ;;  %v388_v7 = vld [vmem:[#allocation7 + $0x14] ss:$8 sps:$4 sm:$0xff]   ;;  %vm98_vm2 = vcmask 228352   ;;  %v488_v21 = vmov 0  }
  0x39   :  { %366 = vmatprep.subr.bf16.mxu0 %v486_v0  ;;  %259 = vmatpush1.bf16.msra.mxu1 %v387_v5  ;;  %v390_v8 = vld [vmem:[#allocation7 + $0x10] ss:$8 sps:$4 sm:$0xff]   ;;  %v391_v9 = vld [vmem:[#allocation7 + $0x24] ss:$8 sps:$4 sm:$0xff]   ;;  %v393_v10 = vld [vmem:[#allocation7 + $0x20] ss:$8 sps:$4 sm:$0xff]  }
  0x3a   :  { %260 = vmatprep.subr.bf16.mxu1 %v388_v7  ;;  %v394_v11 = vld [vmem:[#allocation7 + $0x34] ss:$8 sps:$4 sm:$0xff]   ;;  %v396_v12 = vld [vmem:[#allocation7 + $0x30] ss:$8 sps:$4 sm:$0xff]   ;;  %v397_v13 = vld [vmem:[#allocation7 + $0x44] ss:$8 sps:$4 sm:$0xff]   ;;  %290 = vmatprep.mubr.bf16.mxu1 %v488_v21 }
  0x3b   :  { %v399_v14 = vld [vmem:[#allocation7 + $0x40] ss:$8 sps:$4 sm:$0xff]   ;;  %v400_v15 = vld [vmem:[#allocation7 + $0x54] ss:$8 sps:$4 sm:$0xff]   ;;  %v402_v16 = vld [vmem:[#allocation7 + $0x50] ss:$8 sps:$4 sm:$0xff]  }
  0x3c   :  { %367 = vmatpush3.bf16.msra.mxu0 %v104_v3  ;;  %v403_v17 = vld [vmem:[#allocation7 + $0x64] ss:$8 sps:$4 sm:$0xff]   ;;  %v405_v18 = vld [vmem:[#allocation7 + $0x60] ss:$8 sps:$4 sm:$0xff]   ;;  %v406_v19 = vld [vmem:[#allocation7 + $0x74] ss:$8 sps:$4 sm:$0xff]  }
  0x3d   :  { %261 = vmatpush1.bf16.msra.mxu1 %v390_v8  ;;  %v408_v20 = vld [vmem:[#allocation7 + $0x70] ss:$8 sps:$4 sm:$0xff]   ;;  %v340_v22 = vld [vmem:[%s592_s2] ss:$0 sm:$0xff]  ;;  %v169_v33 = vshrl.u32 %v168_v32, 7  ;;  %vm331_vm3 = vcmask 7168  }
  0x3e   :  { %262 = vmatprep.subr.bf16.mxu1 %v391_v9  ;;  %v166_v35 = vld [vmem:[%s594_s4] sm:$0x3] }
  0x3f   :  { %369 = vmatmul.mubr.msk.bf16.vlgmr.msra.gmra.mrb[0].mxu0 %vm98_vm2, %v384_v6  ;;  %v170_v34 = vsub.s32 0, %v169_v33  ;;  %v174_v36 = vsub.s32 1, %v169_v33  ;;  %v305_v39 = vld [vmem:[%s595_s5] sm:$0x3] }
  0x41   :  { %263 = vmatpush1.bf16.msra.mxu1 %v393_v10  ;;  %v171_v37 = vrot.slane %v166_v35, %v170_v34  ;;  %v175_v38 = vrot.slane %v166_v35, %v174_v36  ;;  %v310_v43 = vrot.slane %v305_v39, %v170_v34  ;;  %v314_v46 = vrot.slane %v305_v39, %v174_v36 }
  0x42   :  { %264 = vmatprep.subr.bf16.mxu1 %v394_v11 }
  0x45   :  { %265 = vmatpush1.bf16.msra.mxu1 %v396_v12 }
  0x46   :  { %266 = vmatprep.subr.bf16.mxu1 %v397_v13 }
  0x49   :  { %267 = vmatpush1.bf16.msra.mxu1 %v399_v14 }
  0x4a   :  { %268 = vmatprep.subr.bf16.mxu1 %v400_v15 }
  0x4d   :  { %269 = vmatpush1.bf16.msra.mxu1 %v402_v16 }
  0x4e   :  { %270 = vmatprep.subr.bf16.mxu1 %v403_v17 }
  0x51   :  { %271 = vmatpush1.bf16.msra.mxu1 %v405_v18 }
  0x52   :  { %272 = vmatprep.subr.bf16.mxu1 %v406_v19 }
  0x55   :  { %273 = vmatpush1.bf16.msra.mxu1 %v408_v20 }
 0x112   :  { %v140_v23 = vpop.f32.mrb[0].mxu0 }
 0x113   :  { %v141_v24 = vadd.f32 %v340_v22, %v140_v23  ;;  %v370_v25 = vpop.f32.mrb[1].mxu0 }
 0x114   :  { %v143_v26 = vpop.f32.mrb[2].mxu0 }
 0x115   :  { %v144_v27 = vadd.f32 %v340_v22, %v143_v26  ;;  %v371_v28 = vpop.f32.mrb[3].mxu0  ;;  %v147_v29 = vmax.f32 %v141_v24, 0.0 }
 0x117   :  { %v148_v30 = vmax.f32 %v144_v27, 0.0 }
 0x119   :  { %v149_v31 = vpack.c.bf16 %v148_v30, %v147_v29 }
 0x11b   :  { %291 = vmatmul.mubr.bf16.vlgmr.msra.gmra.mrb[0].mxu1 %v149_v31 }
 0x1ee   :  { %v292_v40 = vpop.f32.mrb[0].mxu1 }
 0x1ef   :  { %v293_v41 = vadd.f32 %v292_v40, %v171_v37  ;;  %v294_v42 = vpop.f32.mrb[1].mxu1 }
 0x1f0   :  { %v295_v44 = vadd.f32 %v294_v42, %v175_v38  ;;  %v296_v45 = vpop.f32.mrb[2].mxu1 }
 0x1f1   :  { %v301_v47 = vmax.f32 %v293_v41, 0.0  ;;  %v297_v48 = vadd.f32 %v296_v45, %v171_v37  ;;  %v298_v49 = vpop.f32.mrb[3].mxu1 }
 0x1f2   :  { %v302_v50 = vmax.f32 %v295_v44, 0.0  ;;  %v299_v51 = vadd.f32 %v298_v49, %v175_v38 }
 0x1f3   :  { %v303_v52 = vmax.f32 %v297_v48, 0.0  ;;  %v317_v53 = vmul.f32 %v310_v43, %v301_v47 }
 0x1f4   :  { %v304_v54 = vmax.f32 %v299_v51, 0.0  ;;  %v318_v55 = vmul.f32 %v314_v46, %v302_v50 }
 0x1f5   :  { %v319_v56 = vmul.f32 %v310_v43, %v303_v52 }
 0x1f6   :  { %v320_v57 = vmul.f32 %v314_v46, %v304_v54  ;;  %v321_v58 = vadd.f32 %v318_v55, %v317_v53 }
 0x1f8   :  { %322 = vadd.xlane.f32.xlu0 %v321_v58  ;;  %v324_v59 = vadd.f32 %v320_v57, %v319_v56 }
 0x1fc   :  { %325 = vadd.xlane.f32.xlu0 %v324_v59 }
 0x285   :  { %v323_v61 = vpop.xlane.xlu0 %322 }
 0x286   :  { %v329_v62 = vadd.f32 %v328_v60, %v323_v61 }
 0x288   :  { %332 = vst.msk [vmem:[%s597_s7] sm:$0xff] %vm331_vm3, %v329_v62 }
 0x289   :  { %v326_v63 = vpop.xlane.xlu0 %325 }
 0x28a   :  { %v330_v0 = vadd.f32 %v328_v60, %v326_v63 }
 0x28c   :  { %333 = vst.msk [vmem:[%s597_s7 + $0x8] sm:$0xff] %vm331_vm3, %v330_v0 }
 0x28d   :  { %338 = vsyncpa [#allocation4], 1 }
 0x28e   :  { %339 = vsyncpa [#allocation6], 1 }

</bundles_post_ra>
